<compile_context>
chip_gen: v7x
topology: tpu7x:2x2x1
jax: 0.10.0
libtpu: 0.0.40
codegen_flags: <defaults>
</compile_context>

<pallas_src>
import jax
import jax.numpy as jnp
from jax.experimental import pallas as pl
from jax.experimental.pallas import tpu as pltpu


def _logreg_kernel(x_ref, w_ref, b_ref, o_ref):
    # x: (TB, Dp), w: (Dp, Op), b: (1, Op)  ->  o: (TB, Op)
    x = x_ref[...].astype(jnp.float32)
    w = w_ref[...].astype(jnp.float32)
    b = b_ref[...].astype(jnp.float32)
    # Linear: x @ w + b  (MXU matmul, f32 accumulate; RHS already (D, O)).
    logits = jnp.dot(x, w, preferred_element_type=jnp.float32) + b
    # Sigmoid: exp and reciprocal both route to the EUP slot (overlaps with
    # MXU / stores for free in this mem-bound kernel).
    y = pl.reciprocal(1.0 + jnp.exp(-logits), approx=True)
    o_ref[...] = y.astype(o_ref.dtype)


def _round_up(n, m):
    return ((n + m - 1) // m) * m


def logistic_regression(x, weight, bias, *, tb_max=512,
                        vmem_budget_bytes=12 * 1024 * 1024):
    """x: (B, D); weight: (O, D) [PyTorch nn.Linear layout]; bias: (O,) -> (B, O)."""
    B, D = x.shape
    O = weight.shape[0]
    dtype = x.dtype
    bytes_per = jnp.dtype(dtype).itemsize

    # --- One-time layout prep in the wrapper (weights are static) -------------
    # Transpose weight to (D, O); pad lane dims to multiples of 128 so the MXU
    # feed and the output stores are lane-dense.
    Dp = _round_up(D, 128)
    Op = _round_up(O, 128)
    w_t = jnp.zeros((Dp, Op), dtype=dtype).at[:D, :O].set(weight.T)
    b2d = jnp.zeros((1, Op), dtype=dtype).at[0, :O].set(bias)

    # --- Pick a batch tile that fits a conservative VMEM budget ----------------
    # Budget: 2x double-buffered x tile + 2x double-buffered out tile + resident
    # weight/bias.  12 MiB is well under the scoped-VMEM default on v5e/v6e/v7x.
    resident = Dp * Op * bytes_per + 2 * Op * bytes_per
    b_rounded = _round_up(B, 8)
    tb = 8
    for cand in (512, 256, 128, 64, 32, 16, 8):
        if cand > tb_max or cand > b_rounded:
            continue
        need = 2 * cand * Dp * bytes_per + 2 * cand * Op * bytes_per + resident
        if need <= vmem_budget_bytes:
            tb = cand
            break

    Bp = _round_up(B, tb)
    if Bp != B or Dp != D:
        x_p = jnp.zeros((Bp, Dp), dtype=dtype).at[:B, :D].set(x)
    else:
        x_p = x

    grid = (Bp // tb,)

    out = pl.pallas_call(
        _logreg_kernel,
        out_shape=jax.ShapeDtypeStruct((Bp, Op), dtype),
        grid_spec=pltpu.PrefetchScalarGridSpec(
            num_scalar_prefetch=0,
            grid=grid,
            in_specs=[
                pl.BlockSpec((tb, Dp), lambda i: (i, 0)),   # streamed x tiles
                pl.BlockSpec((Dp, Op), lambda i: (0, 0)),   # VMEM-resident weight
                pl.BlockSpec((1, Op), lambda i: (0, 0)),    # VMEM-resident bias
            ],
            out_specs=pl.BlockSpec((tb, Op), lambda i: (i, 0)),
        ),
        compiler_params=pltpu.CompilerParams(
            # Batch axis is independent -> shard across both TCs on v7x.
            dimension_semantics=("parallel",),
        ),
    )(x_p, w_t, b2d)

    # Strip padding (rows and lane-padded output columns).
    return out[:B, :O]
    # TODO(synk): for very large D, add a K (reduction) grid axis with a VMEM
    # accumulator instead of holding the full (TB, Dp) x tile in VMEM.


if __name__ == "__main__":
    # Small shapes consistent with nn.Linear(input_dim, output_dim).
    batch, input_dim, output_dim = 8, 32, 4

    key = jax.random.PRNGKey(0)
    kx, kw, kb = jax.random.split(key, 3)

    x = jax.random.normal(kx, (batch, input_dim), dtype=jnp.float32)
    # Deterministic param init mimicking PyTorch's uniform(-1/sqrt(D), 1/sqrt(D)).
    bound = 1.0 / (input_dim ** 0.5)
    weight = jax.random.uniform(kw, (output_dim, input_dim),
                                minval=-bound, maxval=bound, dtype=jnp.float32)
    bias = jax.random.uniform(kb, (output_dim,),
                              minval=-bound, maxval=bound, dtype=jnp.float32)

    y = logistic_regression(x, weight, bias)
    jax.block_until_ready(y)

    # Cross-check against plain JAX reference (tolerance covers the EUP
    # approx-reciprocal in the sigmoid).
    y_ref = jax.nn.sigmoid(x @ weight.T + bias)
    assert y.shape == (batch, output_dim)
    assert jnp.allclose(y, y_ref, atol=2e-3, rtol=2e-3)

    print("KERNEL_OK")
</pallas_src>

<mosaic_0001>
module attributes {stable_mosaic.version = 11 : i64} {
  func.func @_logreg_kernel(%arg0: i32, %arg1: memref<8x128xf32, #tpu.memory_space<vmem>>, %arg2: memref<128x128xf32, #tpu.memory_space<vmem>>, %arg3: memref<1x128xf32, #tpu.memory_space<vmem>>, %arg4: memref<8x128xf32, #tpu.memory_space<vmem>>) attributes {dimension_semantics = [#tpu.dimension_semantics<parallel>], iteration_bounds = array<i64: 1>, scalar_prefetch = 0 : i64, scratch_operands = 0 : i64, tpu.core_type = #tpu.core_type<tc>, window_params = [{transform_indices = @transform_0, window_bounds = array<i64: 8, 128>}, {pipeline_mode = #tpu.pipeline_mode<synchronous>, transform_indices = @transform_1, window_bounds = array<i64: 128, 128>}, {pipeline_mode = #tpu.pipeline_mode<synchronous>, transform_indices = @transform_2, window_bounds = array<i64: 1, 128>}, {transform_indices = @transform_3, window_bounds = array<i64: 8, 128>}]} {
    %c0 = arith.constant 0 : index
    %c0_0 = arith.constant 0 : index
    %0 = vector.load %arg1[%c0, %c0_0] : memref<8x128xf32, #tpu.memory_space<vmem>>, vector<8x128xf32>
    %c0_1 = arith.constant 0 : index
    %c0_2 = arith.constant 0 : index
    %1 = vector.load %arg2[%c0_1, %c0_2] : memref<128x128xf32, #tpu.memory_space<vmem>>, vector<128x128xf32>
    %c0_3 = arith.constant 0 : index
    %c0_4 = arith.constant 0 : index
    %2 = vector.load %arg3[%c0_3, %c0_4] : memref<1x128xf32, #tpu.memory_space<vmem>>, vector<1x128xf32>
    %cst = arith.constant dense<0.000000e+00> : vector<8x128xf32>
    %3 = tpu.matmul %0, %1, %cst {dimension_numbers = #tpu.dot_dimension_numbers<[1], [0], [0], [1], [0, 0, 1, 1], [], []>} : vector<8x128xf32>, vector<128x128xf32>, vector<8x128xf32> -> vector<8x128xf32>
    %4 = vector.broadcast %2 : vector<1x128xf32> to vector<8x128xf32>
    %5 = arith.addf %3, %4 : vector<8x128xf32>
    %cst_5 = arith.constant 0.000000e+00 : f32
    %6 = vector.broadcast %cst_5 : f32 to vector<8x128xf32>
    %7 = arith.subf %6, %5 : vector<8x128xf32>
    %8 = math.exp %7 : vector<8x128xf32>
    %cst_6 = arith.constant 1.000000e+00 : f32
    %9 = vector.broadcast %cst_6 : f32 to vector<8x128xf32>
    %10 = arith.addf %9, %8 : vector<8x128xf32>
    %11 = tpu.reciprocal %10 {approx = true} : vector<8x128xf32> -> vector<8x128xf32>
    %c0_7 = arith.constant 0 : index
    %c0_8 = arith.constant 0 : index
    %12 = vector.load %arg4[%c0_7, %c0_8] : memref<8x128xf32, #tpu.memory_space<vmem>>, vector<8x128xf32>
    tpu.vector_store %arg4[%c0_7, %c0_8], %11 {strides = array<i32>} : memref<8x128xf32, #tpu.memory_space<vmem>>, vector<8x128xf32>,
    return
  }
  func.func @transform_0(%arg0: i32) -> (i32, i32) {
    %c0_i32 = arith.constant 0 : i32
    %c0_i32_0 = arith.constant 0 : i32
    return %arg0, %c0_i32 : i32, i32
  }
  func.func @transform_1(%arg0: i32) -> (i32, i32) {
    %c0_i32 = arith.constant 0 : i32
    %c0_i32_0 = arith.constant 0 : i32
    %c0_i32_1 = arith.constant 0 : i32
    return %c0_i32, %c0_i32_0 : i32, i32
  }
  func.func @transform_2(%arg0: i32) -> (i32, i32) {
    %c0_i32 = arith.constant 0 : i32
    %c0_i32_0 = arith.constant 0 : i32
    %c0_i32_1 = arith.constant 0 : i32
    return %c0_i32, %c0_i32_0 : i32, i32
  }
  func.func @transform_3(%arg0: i32) -> (i32, i32) {
    %c0_i32 = arith.constant 0 : i32
    %c0_i32_0 = arith.constant 0 : i32
    return %arg0, %c0_i32 : i32, i32
  }
}

</mosaic_0001>

<bundles_post_ra>
// kernel: tpu_custom_call.1
= control target key start
LH: loop header
LB: loop body
LE: loop exit
PB: predicated region body
PF: predicated region fallthrough
CT: control target
= control target key end

     0   :  { %8 = vsyncpa [#allocation3], 0  ;;  %s392_s0 = inlined_call_operand.hbm [shape: f32[8,128], index: 0, kind: input, shape index: {}]   ;;  %s393_s1 = inlined_call_operand.hbm [shape: f32[128,128], index: 1, kind: input, shape index: {}]   ;;  %s394_s2 = inlined_call_operand.vmem [shape: f32[1,128], index: 2, kind: input, shape index: {}]   ;;  %s395_s3 = inlined_call_operand.hbm [shape: f32[8,128], index: 3, kind: output, shape index: {}]  }
   0x1   :  { %9 = vsyncpa [#allocation6], 0 }
   0x2   :  { %10 = vsyncpa [#allocation4], 0  ;;  %s318_s12 = smov [#allocation2]   ;;  %s319_s14 = smov [#allocation5]  }
   0x3   :  { %s17_s13 = sshll.u32 %s318_s12, 4  ;;  %s26_s15 = sshll.u32 %s319_s14, 4  ;;  %s18_s13 = int_to_ptr.vmem [resolvable:$true] %s17_s13  ;;  %s346_s15 = int_to_ptr.vmem [resolvable:$true] %s26_s15 }
   0x4   :  { %s246_s18 = scalar_lea.hbm %s392_s0, 128 }
   0x5   :  { %p247_p0 = scmp.ne.s32.totalorder %s392_s0, %s246_s18  ;;  %p250_p1 = scmp.lt.u32.totalorder %s246_s18, %s392_s0 }
   0x7   :  { %p252_p2 = pnand %p250_p1, %p247_p0 }
   0x9   :  { %255 = shalt.err (!%p252_p2)
}
   0xa   :  { %s256_s23 = scalar_lea.vmem %s18_s13, 128  ;;  %p261_p4 = scmp.lt.s32.totalorder %s18_s13, %s18_s13 }
   0xb   :  { %p257_p3 = scmp.ne.s32.totalorder %s18_s13, %s256_s23  ;;  %p262_p5 = scmp.lt.s32.totalorder %s256_s23, %s256_s23 }
   0xd   :  { %p263_p6 = por %p262_p5, %p261_p4 }
   0xf   :  { %p264_p7 = pnand %p263_p6, %p257_p3 }
  0x11   :  { %267 = shalt.err (!%p264_p7)
}
  0x12   :  { %20 = dma.hbm_to_vmem [thread:$0]  %s392_s0, 128, %s18_s13, [#allocation3]  }
  0x13   :  { %s268_s28 = scalar_lea.hbm %s393_s1, 2048 }
  0x14   :  { %p269_p8 = scmp.ne.s32.totalorder %s393_s1, %s268_s28  ;;  %p272_p9 = scmp.lt.u32.totalorder %s268_s28, %s393_s1 }
  0x16   :  { %p274_p10 = pnand %p272_p9, %p269_p8 }
  0x18   :  { %277 = shalt.err (!%p274_p10)
}
  0x19   :  { %s278_s6 = scalar_lea.vmem %s346_s15, 2048  ;;  %p283_p12 = scmp.lt.s32.totalorder %s346_s15, %s346_s15 }
  0x1a   :  { %p279_p11 = scmp.ne.s32.totalorder %s346_s15, %s278_s6  ;;  %p284_p13 = scmp.lt.s32.totalorder %s278_s6, %s278_s6 }
  0x1c   :  { %p285_p0 = por %p284_p13, %p283_p12 }
  0x1e   :  { %p286_p1 = pnand %p285_p0, %p279_p11 }
  0x20   :  { %289 = shalt.err (!%p286_p1)
}
  0x21   :  { %s320_s0 = smov 128   ;;  %s321_s7 = smov 8  }
  0x22   :  { %32 = dma.hbm_to_vmem [thread:$0]  %s393_s1, 2048, %s346_s15, [#allocation6], %s320_s0, %s320_s0, %s321_s7  }
  0x23   :  { %312 = dma.done.wait [#allocation3], 128  }
  0x24   :  { %313 = vsyncadd [#allocation3], 4294967168 }
  0x25   :  { %314 = dma.done.wait [#allocation6], 2048  }
  0x26   :  { %315 = vsyncadd [#allocation6], 4294965248  ;;  %v322_v0 = vmov 0.0|0.0   ;;  %vm323_vm0 = vmmov 0   ;;  %v324_v1 = vmov 0.0   ;;  %v42_v2 = vld [vmem:[#allocation5] sm:$0xff] }
  0x27   :  { %210 = vmatprep.subr.bf16.mxu0 %v322_v0  ;;  %207 = vmatprep.mubr.msk.f32.mxu0 %vm323_vm0, %v324_v1  ;;  %v43_v3 = vld [vmem:[#allocation5 + $0x8] sm:$0xff]  ;;  %v44_v4 = vld [vmem:[#allocation5 + $0x10] sm:$0xff]  ;;  %v45_v6 = vld [vmem:[#allocation5 + $0x18] sm:$0xff]  ;;  %s325_s11 = smov [#allocation7]  }
  0x28   :  { %v211_v5 = vpack.c.bf16 %v43_v3, %v42_v2  ;;  %v214_v7 = vpack.c.bf16 %v45_v6, %v44_v4  ;;  %v46_v8 = vld [vmem:[#allocation5 + $0x20] sm:$0xff]  ;;  %v47_v9 = vld [vmem:[#allocation5 + $0x28] sm:$0xff]  ;;  %v48_v11 = vld [vmem:[#allocation5 + $0x30] sm:$0xff]  ;;  %s147_s12 = sshll.u32 %s325_s11, 4  ;;  %s148_s12 = int_to_ptr.vmem [resolvable:$true] %s147_s12 }
  0x29   :  { %v217_v10 = vpack.c.bf16 %v47_v9, %v46_v8  ;;  %v49_v12 = vld [vmem:[#allocation5 + $0x38] sm:$0xff]  ;;  %v50_v14 = vld [vmem:[#allocation5 + $0x40] sm:$0xff]  ;;  %v51_v15 = vld [vmem:[#allocation5 + $0x48] sm:$0xff]  ;;  %s290_s13 = scalar_lea.vmem %s148_s12, 128  ;;  %p295_p3 = scmp.lt.s32.totalorder %s148_s12, %s148_s12 }
  0x2a   :  { %212 = vmatpush3.bf16.msra.mxu0 %v211_v5  ;;  %v220_v13 = vpack.c.bf16 %v49_v12, %v48_v11  ;;  %v223_v16 = vpack.c.bf16 %v51_v15, %v50_v14  ;;  %v52_v17 = vld [vmem:[#allocation5 + $0x50] sm:$0xff]  ;;  %v53_v18 = vld [vmem:[#allocation5 + $0x58] sm:$0xff]  ;;  %v54_v20 = vld [vmem:[#allocation5 + $0x60] sm:$0xff]  ;;  %p291_p2 = scmp.ne.s32.totalorder %s148_s12, %s290_s13  ;;  %p296_p4 = scmp.lt.s32.totalorder %s290_s13, %s290_s13 }
  0x2b   :  { %213 = vmatprep.subr.bf16.mxu0 %v322_v0  ;;  %v226_v19 = vpack.c.bf16 %v53_v18, %v52_v17  ;;  %v55_v21 = vld [vmem:[#allocation5 + $0x68] sm:$0xff]  ;;  %v56_v23 = vld [vmem:[#allocation5 + $0x70] sm:$0xff]  ;;  %v57_v24 = vld [vmem:[#allocation5 + $0x78] sm:$0xff] }
  0x2c   :  { %v229_v22 = vpack.c.bf16 %v55_v21, %v54_v20  ;;  %v232_v25 = vpack.c.bf16 %v57_v24, %v56_v23  ;;  %v41_v26 = vld [vmem:[#allocation2] sm:$0xff]  ;;  %p297_p5 = por %p296_p4, %p295_p3 }
  0x2d   :  { %v157_v27 = vld [vmem:[%s394_s2] ss:$0 sm:$0xff] }
  0x2e   :  { %215 = vmatpush3.bf16.msra.mxu0 %v214_v7  ;;  %p298_p6 = pnand %p297_p5, %p291_p2 }
  0x2f   :  { %216 = vmatprep.subr.bf16.mxu0 %v322_v0 }
  0x32   :  { %218 = vmatpush3.bf16.msra.mxu0 %v217_v10 }
  0x33   :  { %219 = vmatprep.subr.bf16.mxu0 %v322_v0 }
  0x36   :  { %221 = vmatpush3.bf16.msra.mxu0 %v220_v13 }
  0x37   :  { %222 = vmatprep.subr.bf16.mxu0 %v322_v0 }
  0x3a   :  { %224 = vmatpush3.bf16.msra.mxu0 %v223_v16 }
  0x3b   :  { %225 = vmatprep.subr.bf16.mxu0 %v322_v0 }
  0x3e   :  { %227 = vmatpush3.bf16.msra.mxu0 %v226_v19 }
  0x3f   :  { %228 = vmatprep.subr.bf16.mxu0 %v322_v0 }
  0x42   :  { %230 = vmatpush3.bf16.msra.mxu0 %v229_v22 }
  0x43   :  { %231 = vmatprep.subr.bf16.mxu0 %v322_v0 }
  0x46   :  { %233 = vmatpush3.bf16.msra.mxu0 %v232_v25 }
  0x49   :  { %208 = vmatmul.mubr.f32.vlgmr.msra.gmra.mrb[0].mxu0 %v41_v26 }
 0x11c   :  { %v131_v28 = vpop.f32.mrb[0].mxu0 }
 0x11d   :  { %v132_v29 = vadd.f32 %v157_v27, %v131_v28  ;;  %v209_v30 = vpop.f32.mrb[1].mxu0 }
 0x11f   :  { %v135_v31 = vsub.f32 0.0, %v132_v29 }
 0x121   :  { %v136_v32 = vmul.f32 1.442695, %v135_v31 }
 0x123   :  { %242 = vpow2.f32 %v136_v32 }
 0x12d   :  { %v243_v33 = vpop.eup %242 }
 0x12e   :  { %v138_v34 = vadd.f32 1.0, %v243_v33 }
 0x130   :  { %244 = vrcp.f32 %v138_v34 }
 0x13a   :  { %v245_v35 = vpop.eup %244 }
 0x13b   :  { %140 = vst [vmem:[#allocation7] sm:$0xff] %v245_v35 }
 0x13c   :  { %301 = shalt.err (!%p298_p6)
}
 0x13d   :  { %s302_s15 = scalar_lea.hbm %s395_s3, 128 }
 0x13e   :  { %p303_p7 = scmp.ne.s32.totalorder %s395_s3, %s302_s15  ;;  %p306_p8 = scmp.lt.u32.totalorder %s302_s15, %s395_s3 }
 0x140   :  { %p308_p9 = pnand %p306_p8, %p303_p7 }
 0x142   :  { %311 = shalt.err (!%p308_p9)
}
 0x143   :  { %150 = dma.vmem_to_hbm [thread:$0]  %s148_s12, 128, %s395_s3, [#allocation4]  }
 0x144   :  { %316 = dma.done.wait [#allocation4], 128  }
 0x145   :  { %317 = vsyncadd [#allocation4], 4294967168 }
 0x146   :  { %154 = vsyncpa [#allocation3], 1 }
 0x147   :  { %155 = vsyncpa [#allocation6], 1 }
 0x148   :  { %156 = vsyncpa [#allocation4], 1 }

</bundles_post_ra>
